<compile_context>
chip_gen: v7x
topology: tpu7x:2x2x1
jax: 0.10.0
libtpu: 0.0.40
codegen_flags: <defaults>
</compile_context>

<pallas_src>
import functools

import jax
import jax.numpy as jnp
import numpy as np
from jax.experimental import pallas as pl
from jax.experimental.pallas import tpu as pltpu


def _ceil_div(a, b):
    return -(-a // b)


def _round_up(a, m):
    return _ceil_div(a, m) * m


def _sin_encoder_kernel(t_ref, m_ref, off_ref, o_ref, *, groups):
    """Fused sinusoidal-encoding kernel (lane-packed).

    t_ref:   (TB, G)  float32  -- G timestep values per physical row
    m_ref:   (G, W)   float32  -- block-diagonal scaled inv_freq rows
    off_ref: (1, W)   float32  -- 0 for sin lanes, pi/2 for cos lanes
    o_ref:   (TB, W)           -- packed [sin | cos] encoding
    """
    t = t_ref[...]                                   # (TB, G)
    phase = t[:, 0:1] * m_ref[0:1, :]                # (TB, W) lane/sublane broadcast
    for g in range(1, groups):                       # static unroll (G is small)
        phase = phase + t[:, g:g + 1] * m_ref[g:g + 1, :]
    # cos(x) = sin(x + pi/2): single transcendental, single lane-dense store.
    o_ref[...] = jnp.sin(phase + off_ref[...]).astype(o_ref.dtype)


def make_inv_freq(dim, dtype=jnp.float32):
    """Matches torch: 1 / 10000 ** (arange(0, dim, 2) / dim)."""
    return jnp.asarray(
        1.0 / (10000.0 ** (np.arange(0, dim, 2, dtype=np.float32) / dim)), dtype=dtype
    )


@functools.partial(jax.jit, static_argnames=("dim", "timesteps", "out_dtype"))
def sin_encoder_forward(t, inv_freq, *, dim, timesteps=1000, out_dtype=jnp.float32):
    """Matches SinEncoder.forward.  t: any shape; returns t.shape + (dim,)."""
    orig_shape = t.shape
    B = int(np.prod(orig_shape)) if len(orig_shape) > 0 else 1
    half = (dim + 1) // 2                        # == inv_freq.shape[0]

    # Frequency pattern of width `dim`: [inv_freq[:half] | inv_freq[:dim-half]],
    # pre-scaled by 1/timesteps (folds the in-kernel scale multiply away).
    pattern = jnp.concatenate(
        [inv_freq[:half], inv_freq[: dim - half]]
    ).astype(jnp.float32) * np.float32(1.0 / timesteps)
    # Per-lane phase offset: 0 -> sin, pi/2 -> cos (cos(x) = sin(x + pi/2)).
    off_pat = np.concatenate(
        [np.zeros((half,), np.float32),
         np.full((dim - half,), np.float32(np.pi / 2), dtype=np.float32)]
    )

    # Lane packing: G logical rows per 128-lane physical row when dim divides 128.
    if dim < 128 and 128 % dim == 0:
        G = 128 // dim
    else:
        G = 1  # dim >= 128 is already lane-dense; other dims fall back to (rows, dim).
        # TODO(synk): dims < 128 that do not divide 128 keep masked stores (rare case).
    W = G * dim

    if G == 1:
        m_rows = pattern.reshape(1, W)
        off_row = jnp.asarray(off_pat.reshape(1, W))
    else:
        # Block-diagonal placement: m[g, h*dim + c] = pattern[c] iff h == g.
        m_rows = (jnp.eye(G, dtype=jnp.float32)[:, :, None]
                  * pattern[None, None, :]).reshape(G, W)
        off_row = jnp.asarray(np.tile(off_pat, G).reshape(1, W))

    # --- block sizing (bytes-targeted, VMEM-guarded, v7x dual-TC aware) ---
    itemsize = int(np.dtype(out_dtype).itemsize)
    bytes_per_row = W * itemsize
    rows = _ceil_div(B, G)                       # physical rows needed
    rows8 = _round_up(rows, 8)

    TARGET_BLOCK_BYTES = 4 << 20                 # ~4 MiB out block: past the DMA knee
    VMEM_OUT_BUDGET = 8 << 20                    # double-buffered out block <= 8 MiB
    TB = max(8, (TARGET_BLOCK_BYTES // bytes_per_row) // 8 * 8)
    TB = min(TB, max(8, (VMEM_OUT_BUDGET // (2 * bytes_per_row)) // 8 * 8))
    TB = min(TB, rows8)
    if TB >= rows8 and rows8 > 8:
        # v7x has 2 TensorCores: prefer >= 2 parallel grid steps if blocks stay >= 1 MiB.
        half_rows = _round_up(_ceil_div(rows8, 2), 8)
        if half_rows * bytes_per_row >= (1 << 20):
            TB = half_rows
    rows_p = _round_up(rows8, TB)
    num_blocks = rows_p // TB

    # Pad the flattened batch; reshape to (rows_p, G) is metadata-only (row-major).
    t_flat = t.reshape(-1).astype(jnp.float32)
    total = rows_p * G
    if total != B:
        t_flat = jnp.pad(t_flat, (0, total - B))
    t2 = t_flat.reshape(rows_p, G)

    n_out = rows_p * W
    cost = pl.CostEstimate(
        flops=int(n_out * (2 * G + 1)),
        transcendentals=int(n_out),
        bytes_accessed=int(rows_p * G * 4 + (G + 1) * W * 4 + n_out * itemsize),
    )

    kernel = functools.partial(_sin_encoder_kernel, groups=G)
    out = pl.pallas_call(
        kernel,
        out_shape=jax.ShapeDtypeStruct((rows_p, W), out_dtype),
        grid=(num_blocks,),
        in_specs=[
            pl.BlockSpec((TB, G), lambda i: (i, 0)),
            pl.BlockSpec((G, W), lambda i: (0, 0)),
            pl.BlockSpec((1, W), lambda i: (0, 0)),
        ],
        out_specs=pl.BlockSpec((TB, W), lambda i: (i, 0)),
        compiler_params=pltpu.CompilerParams(dimension_semantics=("parallel",)),
        cost_estimate=cost,
    )(t2, m_rows, off_row)

    # Packed (rows_p, G*dim) row-major == logical (rows_p*G, dim) row-major: free reshape.
    out = out.reshape(rows_p * G, dim)[:B]
    return out.reshape(orig_shape + (dim,))


def _reference_forward(t, inv_freq, dim, timesteps=1000):
    """Pure-JAX reference mirroring the PyTorch module."""
    tt = t.astype(jnp.float32) / np.float32(timesteps)
    phase = tt[..., None] * inv_freq.astype(jnp.float32)
    sin_encod = jnp.sin(phase)
    cos_encod = jnp.cos(phase) if dim % 2 == 0 else jnp.cos(phase[..., :-1])
    return jnp.concatenate([sin_encod, cos_encod], axis=-1)


if __name__ == "__main__":
    timesteps = 1000
    key = jax.random.PRNGKey(0)
    batch = 8
    t = jax.random.randint(key, (batch,), 0, timesteps).astype(jnp.float32)

    # 1) dim=32 (even, divides 128): lane-packed path (G=4, W=128).
    dim = 32
    inv_freq = make_inv_freq(dim)
    out = jax.block_until_ready(
        sin_encoder_forward(t, inv_freq, dim=dim, timesteps=timesteps)
    )
    assert out.shape == (batch, dim), out.shape
    ref = jax.block_until_ready(_reference_forward(t, inv_freq, dim, timesteps))
    np.testing.assert_allclose(np.asarray(out), np.asarray(ref), rtol=1e-4, atol=1e-4)

    # 2) dim=33 (odd): unpacked fallback, cos drops its last column.
    dim_odd = 33
    inv_freq_odd = make_inv_freq(dim_odd)
    out_odd = jax.block_until_ready(
        sin_encoder_forward(t, inv_freq_odd, dim=dim_odd, timesteps=timesteps)
    )
    assert out_odd.shape == (batch, dim_odd), out_odd.shape
    ref_odd = jax.block_until_ready(
        _reference_forward(t, inv_freq_odd, dim_odd, timesteps)
    )
    np.testing.assert_allclose(
        np.asarray(out_odd), np.asarray(ref_odd), rtol=1e-4, atol=1e-4
    )

    # 3) dim=256 (>=128, lane-dense by construction) with the bf16 output path.
    dim_big = 256
    inv_freq_big = make_inv_freq(dim_big)
    out_bf16 = jax.block_until_ready(
        sin_encoder_forward(
            t, inv_freq_big, dim=dim_big, timesteps=timesteps, out_dtype=jnp.bfloat16
        )
    )
    assert out_bf16.shape == (batch, dim_big), out_bf16.shape
    assert out_bf16.dtype == jnp.bfloat16, out_bf16.dtype
    ref_big = jax.block_until_ready(
        _reference_forward(t, inv_freq_big, dim_big, timesteps)
    )
    np.testing.assert_allclose(
        np.asarray(out_bf16, dtype=np.float32), np.asarray(ref_big), rtol=0, atol=1e-2
    )

    print("KERNEL_OK")
</pallas_src>

<mosaic_0001>
module attributes {stable_mosaic.version = 11 : i64} {
  func.func @_sin_encoder_kernel(%arg0: i32, %arg1: memref<8x4xf32, #tpu.memory_space<vmem>>, %arg2: memref<4x128xf32, #tpu.memory_space<vmem>>, %arg3: memref<1x128xf32, #tpu.memory_space<vmem>>, %arg4: memref<8x128xf32, #tpu.memory_space<vmem>>) attributes {dimension_semantics = [#tpu.dimension_semantics<parallel>], iteration_bounds = array<i64: 1>, scalar_prefetch = 0 : i64, scratch_operands = 0 : i64, tpu.core_type = #tpu.core_type<tc>, window_params = [{transform_indices = @transform_0, window_bounds = array<i64: 8, 4>}, {pipeline_mode = #tpu.pipeline_mode<synchronous>, transform_indices = @transform_1, window_bounds = array<i64: 4, 128>}, {pipeline_mode = #tpu.pipeline_mode<synchronous>, transform_indices = @transform_2, window_bounds = array<i64: 1, 128>}, {transform_indices = @transform_3, window_bounds = array<i64: 8, 128>}]} {
    %c0 = arith.constant 0 : index
    %c0_0 = arith.constant 0 : index
    %0 = vector.load %arg1[%c0, %c0_0] : memref<8x4xf32, #tpu.memory_space<vmem>>, vector<8x4xf32>
    %1 = vector.extract_strided_slice %0 {offsets = [0, 0], sizes = [8, 1], strides = [1, 1]} : vector<8x4xf32> to vector<8x1xf32>
    %c0_1 = arith.constant 0 : index
    %c0_2 = arith.constant 0 : index
    %2 = vector.load %arg2[%c0_1, %c0_2] : memref<4x128xf32, #tpu.memory_space<vmem>>, vector<1x128xf32>
    %3 = vector.broadcast %1 : vector<8x1xf32> to vector<8x128xf32>
    %4 = vector.broadcast %2 : vector<1x128xf32> to vector<8x128xf32>
    %5 = arith.mulf %3, %4 : vector<8x128xf32>
    %6 = vector.extract_strided_slice %0 {offsets = [0, 1], sizes = [8, 1], strides = [1, 1]} : vector<8x4xf32> to vector<8x1xf32>
    %c1 = arith.constant 1 : index
    %c0_3 = arith.constant 0 : index
    %7 = vector.load %arg2[%c1, %c0_3] : memref<4x128xf32, #tpu.memory_space<vmem>>, vector<1x128xf32>
    %8 = vector.broadcast %6 : vector<8x1xf32> to vector<8x128xf32>
    %9 = vector.broadcast %7 : vector<1x128xf32> to vector<8x128xf32>
    %10 = arith.mulf %8, %9 : vector<8x128xf32>
    %11 = arith.addf %5, %10 : vector<8x128xf32>
    %12 = vector.extract_strided_slice %0 {offsets = [0, 2], sizes = [8, 1], strides = [1, 1]} : vector<8x4xf32> to vector<8x1xf32>
    %c2 = arith.constant 2 : index
    %c0_4 = arith.constant 0 : index
    %13 = vector.load %arg2[%c2, %c0_4] : memref<4x128xf32, #tpu.memory_space<vmem>>, vector<1x128xf32>
    %14 = vector.broadcast %12 : vector<8x1xf32> to vector<8x128xf32>
    %15 = vector.broadcast %13 : vector<1x128xf32> to vector<8x128xf32>
    %16 = arith.mulf %14, %15 : vector<8x128xf32>
    %17 = arith.addf %11, %16 : vector<8x128xf32>
    %18 = vector.extract_strided_slice %0 {offsets = [0, 3], sizes = [8, 1], strides = [1, 1]} : vector<8x4xf32> to vector<8x1xf32>
    %c3 = arith.constant 3 : index
    %c0_5 = arith.constant 0 : index
    %19 = vector.load %arg2[%c3, %c0_5] : memref<4x128xf32, #tpu.memory_space<vmem>>, vector<1x128xf32>
    %20 = vector.broadcast %18 : vector<8x1xf32> to vector<8x128xf32>
    %21 = vector.broadcast %19 : vector<1x128xf32> to vector<8x128xf32>
    %22 = arith.mulf %20, %21 : vector<8x128xf32>
    %23 = arith.addf %17, %22 : vector<8x128xf32>
    %c0_6 = arith.constant 0 : index
    %c0_7 = arith.constant 0 : index
    %24 = vector.load %arg3[%c0_6, %c0_7] : memref<1x128xf32, #tpu.memory_space<vmem>>, vector<1x128xf32>
    %25 = vector.broadcast %24 : vector<1x128xf32> to vector<8x128xf32>
    %26 = arith.addf %23, %25 : vector<8x128xf32>
    %27 = math.sin %26 : vector<8x128xf32>
    %c0_8 = arith.constant 0 : index
    %c0_9 = arith.constant 0 : index
    %28 = vector.load %arg4[%c0_8, %c0_9] : memref<8x128xf32, #tpu.memory_space<vmem>>, vector<8x128xf32>
    tpu.vector_store %arg4[%c0_8, %c0_9], %27 {strides = array<i32>} : memref<8x128xf32, #tpu.memory_space<vmem>>, vector<8x128xf32>,
    return
  }
  func.func @transform_0(%arg0: i32) -> (i32, i32) {
    %c0_i32 = arith.constant 0 : i32
    %c0_i32_0 = arith.constant 0 : i32
    return %arg0, %c0_i32 : i32, i32
  }
  func.func @transform_1(%arg0: i32) -> (i32, i32) {
    %c0_i32 = arith.constant 0 : i32
    %c0_i32_0 = arith.constant 0 : i32
    %c0_i32_1 = arith.constant 0 : i32
    return %c0_i32, %c0_i32_0 : i32, i32
  }
  func.func @transform_2(%arg0: i32) -> (i32, i32) {
    %c0_i32 = arith.constant 0 : i32
    %c0_i32_0 = arith.constant 0 : i32
    %c0_i32_1 = arith.constant 0 : i32
    return %c0_i32, %c0_i32_0 : i32, i32
  }
  func.func @transform_3(%arg0: i32) -> (i32, i32) {
    %c0_i32 = arith.constant 0 : i32
    %c0_i32_0 = arith.constant 0 : i32
    return %arg0, %c0_i32 : i32, i32
  }
}

</mosaic_0001>

<bundles_post_ra>
// kernel: sin_encoder_forward.1
= control target key start
LH: loop header
LB: loop body
LE: loop exit
PB: predicated region body
PF: predicated region fallthrough
CT: control target
= control target key end

     0   :  { %v208_v0 = vmov 0   ;;  %v209_v2 = vmov 2   ;;  %v210_v3 = vmov 1   ;;  %v211_v4 = vmov 3   ;;  %s280_s0 = inlined_call_operand.vmem [shape: f32[8,4], index: 0, kind: input, shape index: {}]   ;;  %s281_s1 = inlined_call_operand.vmem [shape: f32[4,128], index: 1, kind: input, shape index: {}]   ;;  %s282_s2 = inlined_call_operand.vmem [shape: f32[1,128], index: 2, kind: input, shape index: {}]   ;;  %s283_s3 = inlined_call_operand.vmem [shape: f32[8,128], index: 3, kind: output, shape index: {}]  }
   0x1   :  { %199 = vset.pattern.permute.xlu0 %v208_v0  ;;  %v14_v1 = vld [vmem:[%s280_s0] sm:$0xff]  ;;  %201 = vset.pattern.permute.xlu1 %v209_v2  ;;  %v212_v32 = vmov 683565275   ;;  %v213_v34 = vmov 2475754826  }
   0x2   :  { %18 = vperm.xlu0 %199, %v14_v1   ;;  %39 = vperm.xlu1 %201, %v14_v1   ;;  %v176_v7 = vld [vmem:[%s281_s1] ss:$0 sm:$0xff]  ;;  %v177_v8 = vld [vmem:[%s281_s1 + $0x1] ss:$0 sm:$0xff]  ;;  %v178_v9 = vld [vmem:[%s281_s1 + $0x2] ss:$0 sm:$0xff] }
   0x3   :  { %v179_v11 = vld [vmem:[%s281_s1 + $0x3] ss:$0 sm:$0xff]  ;;  %v180_v19 = vld [vmem:[%s282_s2] ss:$0 sm:$0xff]  ;;  %v214_v37 = vmov 2131351028  }
   0x4   :  { %v215_v40 = vmov 2102212464   ;;  %v216_v43 = vmov 920167782   ;;  %v217_v46 = vmov 1326507024  }
   0x6   :  { %200 = vset.pattern.permute.xlu0 %v210_v3  ;;  %202 = vset.pattern.permute.xlu1 %v211_v4 }
   0x7   :  { %28 = vperm.xlu0 %200, %v14_v1   ;;  %50 = vperm.xlu1 %202, %v14_v1  }
   0xb   :  { %203 = vset.pattern.permute.xlu0 %v211_v4 }
  0x81   :  { %v19_v5 = vpop.permute.xlu0 %18  ;;  %v40_v6 = vpop.permute.xlu1 %39 }
  0x82   :  { %v25_v13 = vmul.f32 %v176_v7, %v19_v5  ;;  %v46_v15 = vmul.f32 %v178_v9, %v40_v6 }
  0x86   :  { %v29_v10 = vpop.permute.xlu0 %28  ;;  %v51_v12 = vpop.permute.xlu1 %50 }
  0x87   :  { %v35_v14 = vmul.f32 %v177_v8, %v29_v10  ;;  %v57_v17 = vmul.f32 %v179_v11, %v51_v12 }
  0x89   :  { %v36_v16 = vadd.f32 %v35_v14, %v25_v13 }
  0x8b   :  { %v47_v18 = vadd.f32 %v46_v15, %v36_v16 }
  0x8d   :  { %v58_v20 = vadd.f32 %v57_v17, %v47_v18 }
  0x8f   :  { %v256_v21 = vadd.f32 %v180_v19, %v58_v20 }
  0x91   :  { %v70_v22 = vand.u32 2139095040, %v256_v21  ;;  %v67_v26 = vand.u32 2147483647, %v256_v21  ;;  %vm69_vm7 = vcmp.lt.s32.totalorder %v256_v21, 0  ;;  %vm159_vm12 = vweird.f32 %v256_v21 }
  0x93   :  { %v71_v23 = vshrl.u32 %v70_v22, 23  ;;  %v74_v29 = vand.u32 8388607, %v67_v26  ;;  %vm68_vm8 = vcmp.le.f32.partialorder %v67_v26, 0.7853982 }
  0x95   :  { %v181_v24 = vadd.s32 4294967169, %v71_v23  ;;  %v75_v48 = vor.u32 8388608, %v74_v29 }
  0x97   :  { %v77_v25 = vadd.s32 1, %v181_v24  ;;  %v115_v62 = vshll.u32 %v75_v48, 8 }
  0x99   :  { %vm78_vm0 = vcmp.gt.s32.totalorder %v77_v25, 0 }
  0x9a   :  { %v79_v27 = vsel %vm78_vm0, %v77_v25, 0 }
  0x9b   :  { %v81_v28 = vand.u32 31, %v79_v27  ;;  %v80_v31 = vshrl.u32 %v79_v27, 5 }
  0x9d   :  { %v82_v30 = vsub.s32 32, %v81_v28  ;;  %v84_v33 = vshll.u32 %v212_v32, %v81_v28  ;;  %v87_v35 = vshll.u32 %v213_v34, %v81_v28  ;;  %v90_v39 = vshll.u32 %v214_v37, %v81_v28 }
  0x9e   :  { %v93_v42 = vshll.u32 %v215_v40, %v81_v28  ;;  %v96_v45 = vshll.u32 %v216_v43, %v81_v28  ;;  %vm99_vm1 = vcmp.lt.s32.totalorder %v80_v31, 1  ;;  %vm102_vm2 = vcmp.lt.s32.totalorder %v80_v31, 4 }
  0x9f   :  { %v85_v36 = vshrl.u32 %v213_v34, %v82_v30  ;;  %v88_v38 = vshrl.u32 %v214_v37, %v82_v30  ;;  %v91_v41 = vshrl.u32 %v215_v40, %v82_v30  ;;  %v94_v44 = vshrl.u32 %v216_v43, %v82_v30 }
  0xa0   :  { %v97_v47 = vshrl.u32 %v217_v46, %v82_v30  ;;  %v83_v57 = vshrl.u32 %v212_v32, %v82_v30  ;;  %vm101_vm3 = vcmp.lt.s32.totalorder %v80_v31, 3  ;;  %vm100_vm4 = vcmp.lt.s32.totalorder %v80_v31, 2 }
  0xa1   :  { %v86_v49 = vor.u32 %v85_v36, %v84_v33  ;;  %v89_v50 = vor.u32 %v88_v38, %v87_v35  ;;  %v92_v51 = vor.u32 %v91_v41, %v90_v39  ;;  %v95_v52 = vor.u32 %v94_v44, %v93_v42 }
  0xa2   :  { %v98_v53 = vor.u32 %v97_v47, %v96_v45 }
  0xa3   :  { %v104_v54 = vsel %vm102_vm2, %v92_v51, 2102212464  ;;  %v107_v55 = vsel %vm99_vm1, %v86_v49, %v89_v50  ;;  %v111_v56 = vsel %vm99_vm1, %v89_v50, %v92_v51  ;;  %v108_v58 = vsel %vm102_vm2, %v95_v52, 920167782 }
  0xa4   :  { %v112_v59 = vsel %vm102_vm2, %v98_v53, 1326507024  ;;  %v109_v60 = vsel %vm101_vm3, %v92_v51, %v108_v58  ;;  %v103_v63 = vsel %vm99_vm1, %v83_v57, %v86_v49  ;;  %v105_v0 = vsel %vm101_vm3, %v89_v50, %v104_v54 }
  0xa5   :  { %v113_v61 = vsel %vm101_vm3, %v95_v52, %v112_v59  ;;  %v110_v1 = vsel %vm100_vm4, %v107_v55, %v109_v60  ;;  %v106_v7 = vsel %vm100_vm4, %v103_v63, %v105_v0 }
  0xa6   :  { %v114_v2 = vsel %vm100_vm4, %v111_v56, %v113_v61  ;;  %v265_v5 = vmul.u32.u64.low %v115_v62, %v110_v1  ;;  %v266_v6 = vmul.u32.u64.high %v115_v62, %v110_v1, %v265_v5  ;;  %v122_v9 = vmul.u32 %v115_v62, %v106_v7 }
  0xa7   :  { %v262_v3 = vmul.u32.u64.low %v115_v62, %v114_v2  ;;  %v263_v4 = vmul.u32.u64.high %v115_v62, %v114_v2, %v262_v3 }
  0xa8   :  { %v125_v8 = vadd.s32 1, %v266_v6 }
  0xa9   :  { %vm124_vm5 = vc.u32 %v263_v4, %v265_v5  ;;  %v123_v22 = vadd.s32 %v265_v5, %v263_v4 }
  0xaa   :  { %v126_v10 = vsel %vm124_vm5, %v125_v8, %v266_v6 }
  0xab   :  { %v127_v11 = vadd.s32 %v126_v10, %v122_v9 }
  0xad   :  { %v128_v12 = vadd.s32 536870912, %v127_v11 }
  0xaf   :  { %v129_v13 = vshrl.u32 %v128_v12, 30 }
  0xb1   :  { %v130_v14 = vshll.u32 %v129_v13, 30  ;;  %v153_v35 = vsub.s32 4, %v129_v13 }
  0xb3   :  { %v131_v15 = vsub.s32 %v127_v11, %v130_v14  ;;  %v154_v38 = vsel %vm69_vm7, %v153_v35, %v129_v13 }
  0xb4   :  { %v156_v40 = vsel %vm68_vm8, 0, %v154_v38 }
  0xb5   :  { %v133_v16 = vsub.s32 0, %v131_v15  ;;  %v160_v41 = vadd.s32 3, %v156_v40 }
  0xb7   :  { %v182_v17 = vmin.u32 %v133_v16, %v131_v15  ;;  %v161_v42 = vand.u32 3, %v160_v41 }
  0xb9   :  { %v135_v18 = vclz %v182_v17  ;;  %vm166_vm9 = vcmp.eq.s32.totalorder %v161_v42, 2  ;;  %vm163_vm10 = vcmp.eq.s32.totalorder %v161_v42, 0  ;;  %vm162_vm11 = vcmp.lt.s32.totalorder %v161_v42, 2 }
  0xbb   :  { %v183_v19 = vadd.s32 4294967294, %v135_v18 }
  0xbd   :  { %vm184_vm6 = vcmp.lt.s32.totalorder %v183_v19, 0 }
  0xbe   :  { %v138_v20 = vsel %vm184_vm6, 0, %v183_v19 }
  0xbf   :  { %v139_v23 = vsub.s32 32, %v138_v20  ;;  %v143_v24 = vsub.s32 4294967266, %v138_v20  ;;  %v140_v25 = vshll.u32 %v131_v15, %v138_v20 }
  0xc1   :  { %v141_v27 = vshrl.u32 %v123_v22, %v139_v23  ;;  %v144_v28 = vadd.s32 127, %v143_v24 }
  0xc3   :  { %v142_v29 = vor.u32 %v141_v27, %v140_v25  ;;  %v145_v30 = vshll.u32 %v144_v28, 23 }
  0xc5   :  { %v146_v31 = vor.u32 4788187, %v145_v30  ;;  %v149_v33 = vcvt.s32.f32 %v142_v29 }
  0xc7   :  { %v147_v32 = vand.u32 2147483647, %v146_v31 }
  0xc9   :  { %v150_v34 = vmul.f32 %v149_v33, %v147_v32 }
  0xcb   :  { %v151_v36 = vxor.u32 2147483648, %v150_v34 }
  0xcd   :  { %v152_v37 = vsel %vm69_vm7, %v151_v36, %v150_v34 }
  0xce   :  { %v155_v39 = vsel %vm68_vm8, %v256_v21, %v152_v37 }
  0xcf   :  { %204 = vcosq.f32 %v155_v39 }
  0xd0   :  { %206 = vsinq.f32 %v155_v39 }
  0xd9   :  { %v205_v43 = vpop.eup %204 }
  0xda   :  { %v207_v44 = vpop.eup %206  ;;  %v167_v45 = vxor.u32 2147483648, %v205_v43 }
  0xdb   :  { %v164_v46 = vxor.u32 2147483648, %v207_v44 }
  0xdc   :  { %v168_v47 = vsel %vm166_vm9, %v167_v45, %v207_v44 }
  0xdd   :  { %v165_v48 = vsel %vm163_vm10, %v205_v43, %v164_v46 }
  0xde   :  { %v169_v26 = vsel %vm162_vm11, %v165_v48, %v168_v47 }
  0xdf   :  { %v170_v49 = vsel %vm159_vm12, nan, %v169_v26 }
  0xe0   :  { %171 = vst [vmem:[%s283_s3] sm:$0xff] %v170_v49 }

</bundles_post_ra>
